<compile_context>
chip_gen: v5e
topology: v5e:2x2
jax: 0.10.0
libtpu: 0.0.40
codegen_flags: <defaults>
</compile_context>

<pallas_src>
import functools

import jax
import jax.numpy as jnp
from jax.experimental import pallas as pl
from jax.experimental.pallas import tpu as pltpu

INPUT_DIM = 5
HIDDEN_DIM = 64
OUTPUT_DIM = 5

SUBLANE = 8
LANE = 128


def _round_up(a, m):
    return (a + m - 1) // m * m


def mlp_kernel(x_ref, w1_ref, b1_ref, w2_ref, b2_ref, o_ref):
    # fc1: (TILE_B, in_pad) @ (in_pad, hidden) -> f32 accumulator
    h = jnp.dot(x_ref[...], w1_ref[...], preferred_element_type=jnp.float32)
    h = jnp.maximum(h + b1_ref[...].astype(jnp.float32), 0.0)
    # fc2: keep f32 LHS; (TILE_B, hidden) @ (hidden, out_pad=128) -> lane-dense result
    y = jnp.dot(h, w2_ref[...], preferred_element_type=jnp.float32)
    y = y + b2_ref[...].astype(jnp.float32)
    # Unmasked, lane-dense store into the 128-wide padded output slab.
    o_ref[...] = y.astype(o_ref.dtype)


@functools.partial(jax.jit, static_argnames=("tile_b",))
def simple_nn_forward(x, w1, b1, w2, b2, *, tile_b=512):
    """x: (B, INPUT_DIM); w1: (INPUT_DIM, HIDDEN); b1: (HIDDEN,) or (1, HIDDEN);
    w2: (HIDDEN, OUTPUT_DIM); b2: (OUTPUT_DIM,) or (1, OUTPUT_DIM)."""
    B, in_dim = x.shape
    hidden = w1.shape[1]
    out_dim = w2.shape[1]
    dtype = x.dtype

    in_pad = _round_up(in_dim, SUBLANE)     # 5 -> 8   (aligned input payload)
    out_pad = _round_up(out_dim, LANE)      # 5 -> 128 (lane-dense output)

    # Tile the batch; don't over-pad tiny batches.
    tile_b = min(tile_b, _round_up(B, SUBLANE))
    b_pad = _round_up(B, tile_b)

    # Zero-pad parameters / inputs so all blocks are aligned and the padded
    # output columns come out exactly zero (sliced away below).
    xp = jnp.zeros((b_pad, in_pad), dtype).at[:B, :in_dim].set(x)
    w1p = jnp.zeros((in_pad, hidden), dtype).at[:in_dim, :].set(w1)
    b1p = jnp.asarray(b1, dtype).reshape(1, hidden)
    w2p = jnp.zeros((hidden, out_pad), dtype).at[:, :out_dim].set(w2)
    b2p = (
        jnp.zeros((1, out_pad), dtype)
        .at[:, :out_dim]
        .set(jnp.asarray(b2, dtype).reshape(1, out_dim))
    )

    grid = (b_pad // tile_b,)

    out_padded = pl.pallas_call(
        mlp_kernel,
        out_shape=jax.ShapeDtypeStruct((b_pad, out_pad), dtype),
        grid_spec=pltpu.PrefetchScalarGridSpec(
            num_scalar_prefetch=0,
            grid=grid,
            in_specs=[
                # Streaming batch tiles.
                pl.BlockSpec((tile_b, in_pad), lambda i: (i, 0)),
                # Weights / biases: constant index_map -> resident in VMEM.
                pl.BlockSpec((in_pad, hidden), lambda i: (0, 0)),
                pl.BlockSpec((1, hidden), lambda i: (0, 0)),
                pl.BlockSpec((hidden, out_pad), lambda i: (0, 0)),
                pl.BlockSpec((1, out_pad), lambda i: (0, 0)),
            ],
            out_specs=pl.BlockSpec((tile_b, out_pad), lambda i: (i, 0)),
        ),
        compiler_params=pltpu.CompilerParams(
            # Independent batch tiles: shard across TCs on v7x, no-op elsewhere.
            dimension_semantics=("parallel",),
            # Sized for v7x's 64 MiB physical VMEM; tiles here are ~MiB-scale.
            vmem_limit_bytes=32 << 20,
        ),
    )(xp, w1p, b1p, w2p, b2p)

    return out_padded[:B, :out_dim]


def reference_forward(x, w1, b1, w2, b2):
    h = jnp.maximum(x @ w1 + jnp.reshape(b1, (1, -1)), 0.0)
    return h @ w2 + jnp.reshape(b2, (1, -1))


if __name__ == "__main__":
    key = jax.random.PRNGKey(0)
    kx, k1, k2, k3, k4, kx2 = jax.random.split(key, 6)

    # PyTorch-like uniform fan-in init, deterministic.
    bound1 = 1.0 / (INPUT_DIM ** 0.5)
    w1 = jax.random.uniform(k1, (INPUT_DIM, HIDDEN_DIM), jnp.float32, -bound1, bound1)
    b1 = jax.random.uniform(k2, (HIDDEN_DIM,), jnp.float32, -bound1, bound1)
    bound2 = 1.0 / (HIDDEN_DIM ** 0.5)
    w2 = jax.random.uniform(k3, (HIDDEN_DIM, OUTPUT_DIM), jnp.float32, -bound2, bound2)
    b2 = jax.random.uniform(k4, (OUTPUT_DIM,), jnp.float32, -bound2, bound2)

    # Small batch (original use case).
    B = 8
    x = jax.random.normal(kx, (B, INPUT_DIM), dtype=jnp.float32)
    out = jax.block_until_ready(simple_nn_forward(x, w1, b1, w2, b2))
    ref = reference_forward(x, w1, b1, w2, b2)
    assert out.shape == (B, OUTPUT_DIM)
    assert jnp.allclose(out, ref, atol=1e-5, rtol=1e-5)

    # Multi-tile path (non-divisible batch) to exercise grid + padding logic.
    B2 = 300
    x2 = jax.random.normal(kx2, (B2, INPUT_DIM), dtype=jnp.float32)
    out2 = jax.block_until_ready(simple_nn_forward(x2, w1, b1, w2, b2, tile_b=128))
    ref2 = reference_forward(x2, w1, b1, w2, b2)
    assert out2.shape == (B2, OUTPUT_DIM)
    assert jnp.allclose(out2, ref2, atol=1e-5, rtol=1e-5)

    print("KERNEL_OK")
</pallas_src>

<mosaic_0001>
module attributes {stable_mosaic.version = 11 : i64} {
  func.func @mlp_kernel(%arg0: i32, %arg1: memref<8x8xf32, #tpu.memory_space<vmem>>, %arg2: memref<8x64xf32, #tpu.memory_space<vmem>>, %arg3: memref<1x64xf32, #tpu.memory_space<vmem>>, %arg4: memref<64x128xf32, #tpu.memory_space<vmem>>, %arg5: memref<1x128xf32, #tpu.memory_space<vmem>>, %arg6: memref<8x128xf32, #tpu.memory_space<vmem>>) attributes {dimension_semantics = [#tpu.dimension_semantics<parallel>], iteration_bounds = array<i64: 1>, scalar_prefetch = 0 : i64, scratch_operands = 0 : i64, tpu.core_type = #tpu.core_type<tc>, window_params = [{transform_indices = @transform_0, window_bounds = array<i64: 8, 8>}, {pipeline_mode = #tpu.pipeline_mode<synchronous>, transform_indices = @transform_1, window_bounds = array<i64: 8, 64>}, {pipeline_mode = #tpu.pipeline_mode<synchronous>, transform_indices = @transform_2, window_bounds = array<i64: 1, 64>}, {pipeline_mode = #tpu.pipeline_mode<synchronous>, transform_indices = @transform_3, window_bounds = array<i64: 64, 128>}, {pipeline_mode = #tpu.pipeline_mode<synchronous>, transform_indices = @transform_4, window_bounds = array<i64: 1, 128>}, {transform_indices = @transform_5, window_bounds = array<i64: 8, 128>}]} {
    %c0 = arith.constant 0 : index
    %c0_0 = arith.constant 0 : index
    %0 = vector.load %arg1[%c0, %c0_0] : memref<8x8xf32, #tpu.memory_space<vmem>>, vector<8x8xf32>
    %c0_1 = arith.constant 0 : index
    %c0_2 = arith.constant 0 : index
    %1 = vector.load %arg2[%c0_1, %c0_2] : memref<8x64xf32, #tpu.memory_space<vmem>>, vector<8x64xf32>
    %cst = arith.constant dense<0.000000e+00> : vector<8x64xf32>
    %2 = tpu.matmul %0, %1, %cst {dimension_numbers = #tpu.dot_dimension_numbers<[1], [0], [0], [1], [0, 0, 1, 1], [], []>} : vector<8x8xf32>, vector<8x64xf32>, vector<8x64xf32> -> vector<8x64xf32>
    %c0_3 = arith.constant 0 : index
    %c0_4 = arith.constant 0 : index
    %3 = vector.load %arg3[%c0_3, %c0_4] : memref<1x64xf32, #tpu.memory_space<vmem>>, vector<1x64xf32>
    %4 = vector.broadcast %3 : vector<1x64xf32> to vector<8x64xf32>
    %5 = arith.addf %2, %4 : vector<8x64xf32>
    %cst_5 = arith.constant 0.000000e+00 : f32
    %6 = vector.broadcast %cst_5 : f32 to vector<8x64xf32>
    %7 = arith.maximumf %5, %6 : vector<8x64xf32>
    %c0_6 = arith.constant 0 : index
    %c0_7 = arith.constant 0 : index
    %8 = vector.load %arg4[%c0_6, %c0_7] : memref<64x128xf32, #tpu.memory_space<vmem>>, vector<64x128xf32>
    %cst_8 = arith.constant dense<0.000000e+00> : vector<8x128xf32>
    %9 = tpu.matmul %7, %8, %cst_8 {dimension_numbers = #tpu.dot_dimension_numbers<[1], [0], [0], [1], [0, 0, 1, 1], [], []>} : vector<8x64xf32>, vector<64x128xf32>, vector<8x128xf32> -> vector<8x128xf32>
    %c0_9 = arith.constant 0 : index
    %c0_10 = arith.constant 0 : index
    %10 = vector.load %arg5[%c0_9, %c0_10] : memref<1x128xf32, #tpu.memory_space<vmem>>, vector<1x128xf32>
    %11 = vector.broadcast %10 : vector<1x128xf32> to vector<8x128xf32>
    %12 = arith.addf %9, %11 : vector<8x128xf32>
    %c0_11 = arith.constant 0 : index
    %c0_12 = arith.constant 0 : index
    %13 = vector.load %arg6[%c0_11, %c0_12] : memref<8x128xf32, #tpu.memory_space<vmem>>, vector<8x128xf32>
    tpu.vector_store %arg6[%c0_11, %c0_12], %12 {strides = array<i32>} : memref<8x128xf32, #tpu.memory_space<vmem>>, vector<8x128xf32>,
    return
  }
  func.func @transform_0(%arg0: i32) -> (i32, i32) {
    %c0_i32 = arith.constant 0 : i32
    %c0_i32_0 = arith.constant 0 : i32
    return %arg0, %c0_i32 : i32, i32
  }
  func.func @transform_1(%arg0: i32) -> (i32, i32) {
    %c0_i32 = arith.constant 0 : i32
    %c0_i32_0 = arith.constant 0 : i32
    %c0_i32_1 = arith.constant 0 : i32
    return %c0_i32, %c0_i32_0 : i32, i32
  }
  func.func @transform_2(%arg0: i32) -> (i32, i32) {
    %c0_i32 = arith.constant 0 : i32
    %c0_i32_0 = arith.constant 0 : i32
    %c0_i32_1 = arith.constant 0 : i32
    return %c0_i32, %c0_i32_0 : i32, i32
  }
  func.func @transform_3(%arg0: i32) -> (i32, i32) {
    %c0_i32 = arith.constant 0 : i32
    %c0_i32_0 = arith.constant 0 : i32
    %c0_i32_1 = arith.constant 0 : i32
    return %c0_i32, %c0_i32_0 : i32, i32
  }
  func.func @transform_4(%arg0: i32) -> (i32, i32) {
    %c0_i32 = arith.constant 0 : i32
    %c0_i32_0 = arith.constant 0 : i32
    %c0_i32_1 = arith.constant 0 : i32
    return %c0_i32, %c0_i32_0 : i32, i32
  }
  func.func @transform_5(%arg0: i32) -> (i32, i32) {
    %c0_i32 = arith.constant 0 : i32
    %c0_i32_0 = arith.constant 0 : i32
    return %arg0, %c0_i32 : i32, i32
  }
}

</mosaic_0001>

<bundles_post_ra>
// kernel: simple_nn_forward.1
= control target key start
LH: loop header
LB: loop body
LE: loop exit
PB: predicated region body
PF: predicated region fallthrough
CT: control target
= control target key end

     0   :  { %vm27_vm0 = vcmask 64512   ;;  %s206_s0 = inlined_call_operand.vmem [shape: f32[8,8], index: 0, kind: input, shape index: {}]   ;;  %s207_s1 = inlined_call_operand.vmem [shape: f32[8,64], index: 1, kind: input, shape index: {}]   ;;  %s208_s2 = inlined_call_operand.vmem [shape: f32[1,64], index: 2, kind: input, shape index: {}]   ;;  %s209_s3 = inlined_call_operand.vmem [shape: f32[64,128], index: 3, kind: input, shape index: {}]   ;;  %s210_s4 = inlined_call_operand.vmem [shape: f32[1,128], index: 4, kind: input, shape index: {}]   ;;  %s211_s5 = inlined_call_operand.hbm [shape: f32[8,128], index: 5, kind: output, shape index: {}]  }
   0x1   :  { %v22_v0 = vld [vmem:[%s207_s1] sm:$0xff]  ;;  %v59_v2 = vld [vmem:[%s209_s3 + $0x38] sm:$0xff]  ;;  %v58_v3 = vld [vmem:[%s209_s3 + $0x30] sm:$0xff] }
   0x2   :  { %v21_v1 = vld [vmem:[%s206_s0] sm:$0xff]  ;;  %46 = vmatpush.msra.mxu0 %v22_v0  ;;  %76 = vmatpush.msra.mxu1 %v59_v2  ;;  %v57_v4 = vld [vmem:[%s209_s3 + $0x28] sm:$0xff] }
   0x3   :  { %105 = vmatmul.msk.f32.vlgmr.msra.gmra.mxu0 %vm27_vm0, %v21_v1 }
   0x4   :  { %77 = vmatpush.msra.mxu1 %v58_v3 }
   0x5   :  { %10 = vsyncpa [#allocation3], 0  ;;  %v56_v5 = vld [vmem:[%s209_s3 + $0x20] sm:$0xff]  ;;  %v55_v6 = vld [vmem:[%s209_s3 + $0x18] sm:$0xff]  ;;  %vm64_vm1 = vcmask 523264   ;;  %s136_s15 = smov [#allocation2]  }
   0x6   :  { %78 = vmatpush.msra.mxu1 %v57_v4  ;;  %v54_v7 = vld [vmem:[%s209_s3 + $0x10] sm:$0xff]  ;;  %v53_v8 = vld [vmem:[%s209_s3 + $0x8] sm:$0xff]  ;;  %v52_v9 = vld [vmem:[%s209_s3] sm:$0xff]  ;;  %s94_s16 = sshll.u32 %s136_s15, 4  ;;  %s96_s3 = sshll.u32 %s211_s5, 4  ;;  %s95_s16 = int_to_ptr.vmem [resolvable:$true] %s94_s16  ;;  %s97_s3 = int_to_ptr.hbm [resolvable:$true] %s96_s3 }
   0x7   :  { %v108_v10 = vld [vmem:[%s208_s2] ss:$0 sm:$0xff] }
   0x8   :  { %79 = vmatpush.msra.mxu1 %v56_v5  ;;  %v109_v14 = vld [vmem:[%s210_s4] ss:$0 sm:$0xff] }
   0xa   :  { %80 = vmatpush.msra.mxu1 %v55_v6 }
   0xc   :  { %81 = vmatpush.msra.mxu1 %v54_v7 }
   0xe   :  { %82 = vmatpush.msra.mxu1 %v53_v8 }
  0x10   :  { %83 = vmatpush.msra.mxu1 %v52_v9 }
  0x80   :  { %v48_v11 = vpop.f32.mrf.mxu0 }
  0x81   :  { %v49_v12 = vadd.f32 %v108_v10, %v48_v11 }
  0x83   :  { %v51_v13 = vmax.f32 %v49_v12, 0.0 }
  0x85   :  { %106 = vmatmul.msk.f32.vlgmr.msra.gmra.mxu1 %vm64_vm1, %v51_v13 }
 0x102   :  { %v85_v15 = vpop.f32.mrf.mxu1 }
 0x103   :  { %v86_v16 = vadd.f32 %v109_v14, %v85_v15 }
 0x105   :  { %88 = vst [vmem:[#allocation2] sm:$0xff] %v86_v16 }
 0x106   :  { %99 = dma.vmem_to_hbm [thread:$0]  %s95_s16, 128, %s97_s3, [#allocation3]  }
 0x107   :  { %134 = dma.done.wait [#allocation3], 128  }
 0x108   :  { %135 = vsyncadd [#allocation3], 4294967168 }
 0x109   :  { %104 = vsyncpa [#allocation3], 1 }

</bundles_post_ra>
